<compile_context>
chip_gen: v6e
topology: v6e:2x2x1
jax: 0.10.0
libtpu: 0.0.40
codegen_flags: <defaults>
</compile_context>

<pallas_src>
import functools

import jax
import jax.numpy as jnp
from jax.experimental import pallas as pl
from jax.experimental.pallas import tpu as pltpu


LANE = 128


def _round_up(x, m):
    return ((x + m - 1) // m) * m


# ----------------------------- kernels --------------------------------------


def _masked_softmax(logits, mask):
    # numerically-stable softmax restricted to `mask` lanes; masked lanes -> 0
    neg = jnp.float32(-1e30)
    ml = jnp.where(mask, logits, neg)
    m = jnp.max(ml, axis=-1, keepdims=True)
    e = jnp.where(mask, jnp.exp(ml - m), 0.0)
    s = jnp.sum(e, axis=-1, keepdims=True)
    # one reciprocal + multiply instead of a per-lane divide
    return e * pl.reciprocal(s, approx=False)


def _fused_head_softmax(logits, num_e, num_a):
    # lanes [0, num_e) -> emotion head, [num_e, num_e+num_a) -> act head,
    # remaining padded lanes -> 0 (excluded from both softmaxes)
    lane = jax.lax.broadcasted_iota(jnp.int32, logits.shape, 1)
    emo_mask = lane < num_e
    act_mask = jnp.logical_and(lane >= num_e, lane < num_e + num_a)
    return _masked_softmax(logits, emo_mask) + _masked_softmax(logits, act_mask)


def _single_heads_kernel(x_ref, w_ref, b_ref, out_ref, *, num_e, num_a):
    # single lane-dense matmul for BOTH heads (W = [We || Wa || 0-pad])
    logits = jnp.dot(x_ref[...], w_ref[...],
                     preferred_element_type=jnp.float32) + b_ref[...]
    out_ref[...] = _fused_head_softmax(logits, num_e, num_a).astype(out_ref.dtype)


def _double_heads_kernel(x_ref, w1_ref, b1_ref, w2_ref, b2_ref, out_ref, *,
                         num_e, num_a):
    # fused layer-1: x @ [We1 || Wa1]  -> (block_b, 1024)
    h = jnp.dot(x_ref[...], w1_ref[...],
                preferred_element_type=jnp.float32) + b1_ref[...]
    h = jnp.maximum(h, 0.0)                       # ReLU, f32 elementwise (v5e path)
    h = h.astype(w2_ref.dtype)                    # bf16 MXU path if weights are bf16
    # fused layer-2: block-diagonal [We2 0 ; 0 Wa2], zero-padded to 128 lanes
    logits = jnp.dot(h, w2_ref[...],
                     preferred_element_type=jnp.float32) + b2_ref[...]
    out_ref[...] = _fused_head_softmax(logits, num_e, num_a).astype(out_ref.dtype)


# ----------------------------- wrapper ---------------------------------------


def _full_spec(shape):
    # whole-array block, replicated across the batch grid axis
    return pl.BlockSpec(shape, lambda i, _s=shape: tuple(0 for _ in _s))


def _pick_block_b(B):
    # largest bounded multiple of 8; for B > 8 prefer >=2 grid steps so the
    # "parallel" batch axis can shard across the two TensorCores on v7x.
    cap = 512
    if B <= 8:
        return 8
    half = pl.cdiv(B, 2)
    return min(cap, _round_up(half, 8))


def dialogue_emotion_heads(x, params, *, double, block_b=None):
    """Run the emotion/act heads on pooled BERT features x: [B, H]."""
    B, H = x.shape
    dtype = x.dtype

    # ---- fuse + pad the head weights into lane-dense operands (wrapper-side
    # layout plumbing; kernel sees one matmul per layer, one 128-wide output) ----
    if double:
        we1, be1, we2, be2, wa1, ba1, wa2, ba2 = params
        num_e = we2.shape[1]
        num_a = wa2.shape[1]
        hid_e = we1.shape[1]
        hid = hid_e + wa1.shape[1]
        pad = max(LANE, _round_up(num_e + num_a, LANE))

        w1 = jnp.concatenate([we1, wa1], axis=1).astype(dtype)          # [H, 1024]
        b1 = jnp.concatenate([be1, ba1], axis=1).astype(jnp.float32)    # [1, 1024]

        w2 = jnp.zeros((hid, pad), dtype)                               # block-diag
        w2 = w2.at[:hid_e, :num_e].set(we2.astype(dtype))
        w2 = w2.at[hid_e:, num_e:num_e + num_a].set(wa2.astype(dtype))
        b2 = jnp.zeros((1, pad), jnp.float32)
        b2 = b2.at[:, :num_e].set(be2.astype(jnp.float32))
        b2 = b2.at[:, num_e:num_e + num_a].set(ba2.astype(jnp.float32))

        weight_args = (w1, b1, w2, b2)
        kernel = functools.partial(_double_heads_kernel, num_e=num_e, num_a=num_a)
    else:
        we, be, wa, ba = params
        num_e = we.shape[1]
        num_a = wa.shape[1]
        pad = max(LANE, _round_up(num_e + num_a, LANE))

        w = jnp.zeros((H, pad), dtype)                                  # [H, 128]
        w = w.at[:, :num_e].set(we.astype(dtype))
        w = w.at[:, num_e:num_e + num_a].set(wa.astype(dtype))
        b = jnp.zeros((1, pad), jnp.float32)
        b = b.at[:, :num_e].set(be.astype(jnp.float32))
        b = b.at[:, num_e:num_e + num_a].set(ba.astype(jnp.float32))

        weight_args = (w, b)
        kernel = functools.partial(_single_heads_kernel, num_e=num_e, num_a=num_a)

    # ---- batch tiling: bounded multiple-of-8 tile, pad B (no modulo assert) ----
    if block_b is None:
        block_b = _pick_block_b(B)
    block_b = max(8, _round_up(min(block_b, B), 8))
    b_pad = _round_up(B, block_b)
    if b_pad != B:
        x = jnp.pad(x, ((0, b_pad - B), (0, 0)))
    grid = (b_pad // block_b,)

    in_specs = [pl.BlockSpec((block_b, H), lambda i: (i, 0))]
    in_specs += [_full_spec(w_.shape) for w_ in weight_args]
    out_specs = pl.BlockSpec((block_b, pad), lambda i: (i, 0))
    out_shape = jax.ShapeDtypeStruct((b_pad, pad), dtype)

    fused = pl.pallas_call(
        kernel,
        grid=grid,
        in_specs=in_specs,
        out_specs=out_specs,
        out_shape=out_shape,
        compiler_params=pltpu.CompilerParams(
            dimension_semantics=("parallel",)),
    )(x, *weight_args)

    emo = fused[:B, :num_e]
    act = fused[:B, num_e:num_e + num_a]
    return emo, act


# ---------------------- deterministic parameter init ------------------------


def _linear_params(key, in_dim, out_dim):
    # torch nn.Linear-like uniform init, deterministic; stored as [in, out] / [1, out]
    kw, kb = jax.random.split(key)
    bound = 1.0 / jnp.sqrt(in_dim)
    w = jax.random.uniform(kw, (in_dim, out_dim), jnp.float32, -bound, bound)
    b = jax.random.uniform(kb, (1, out_dim), jnp.float32, -bound, bound)
    return w, b


def make_params(key, hidden, num_emotion, num_act, double):
    keys = jax.random.split(key, 4)
    if double:
        we1, be1 = _linear_params(keys[0], hidden, 512)
        we2, be2 = _linear_params(keys[1], 512, num_emotion)
        wa1, ba1 = _linear_params(keys[2], hidden, 512)
        wa2, ba2 = _linear_params(keys[3], 512, num_act)
        return (we1, be1, we2, be2, wa1, ba1, wa2, ba2)
    else:
        we, be = _linear_params(keys[0], hidden, num_emotion)
        wa, ba = _linear_params(keys[1], hidden, num_act)
        return (we, be, wa, ba)


# ----------------------------- reference -------------------------------------


def reference_heads(x, params, *, double):
    if double:
        we1, be1, we2, be2, wa1, ba1, wa2, ba2 = params
        he = jnp.maximum(x @ we1 + be1, 0.0)
        ha = jnp.maximum(x @ wa1 + ba1, 0.0)
        return (jax.nn.softmax(he @ we2 + be2, axis=1),
                jax.nn.softmax(ha @ wa2 + ba2, axis=1))
    else:
        we, be, wa, ba = params
        return (jax.nn.softmax(x @ we + be, axis=1),
                jax.nn.softmax(x @ wa + ba, axis=1))


# ------------------------------- main ----------------------------------------

if __name__ == "__main__":
    # TODO(synk): tokenizer + pretrained BERT encoder are not reproducible from
    # the module definition; the kernel starts from the pooled [CLS] feature.
    B, HIDDEN = 8, 32          # small synthetic "bert hidden size"
    NUM_EMOTION, NUM_ACT = 7, 4

    key = jax.random.PRNGKey(0)
    kx, kp1, kp2 = jax.random.split(key, 3)
    x = jax.random.normal(kx, (B, HIDDEN), jnp.float32)   # pooled BERT [CLS] features

    ok = True
    for double in (False, True):
        params = make_params(kp2 if double else kp1, HIDDEN, NUM_EMOTION, NUM_ACT, double)
        emo, act = dialogue_emotion_heads(x, params, double=double)
        emo = jax.block_until_ready(emo)
        act = jax.block_until_ready(act)
        emo_ref, act_ref = reference_heads(x, params, double=double)
        ok &= bool(jnp.allclose(emo, emo_ref, atol=1e-5, rtol=1e-5))
        ok &= bool(jnp.allclose(act, act_ref, atol=1e-5, rtol=1e-5))
        # probabilities should sum to 1 along dim=1
        ok &= bool(jnp.allclose(jnp.sum(emo, axis=1), 1.0, atol=1e-5))
        ok &= bool(jnp.allclose(jnp.sum(act, axis=1), 1.0, atol=1e-5))

    if ok:
        print("KERNEL_OK")
    else:
        print("KERNEL_MISMATCH")
</pallas_src>

<mosaic_0001>
module attributes {stable_mosaic.version = 11 : i64} {
  func.func @_single_heads_kernel(%arg0: i32, %arg1: memref<8x32xf32, #tpu.memory_space<vmem>>, %arg2: memref<32x128xf32, #tpu.memory_space<vmem>>, %arg3: memref<1x128xf32, #tpu.memory_space<vmem>>, %arg4: memref<8x128xf32, #tpu.memory_space<vmem>>) attributes {dimension_semantics = [#tpu.dimension_semantics<parallel>], iteration_bounds = array<i64: 1>, scalar_prefetch = 0 : i64, scratch_operands = 0 : i64, tpu.core_type = #tpu.core_type<tc>, window_params = [{transform_indices = @transform_0, window_bounds = array<i64: 8, 32>}, {pipeline_mode = #tpu.pipeline_mode<synchronous>, transform_indices = @transform_1, window_bounds = array<i64: 32, 128>}, {pipeline_mode = #tpu.pipeline_mode<synchronous>, transform_indices = @transform_2, window_bounds = array<i64: 1, 128>}, {transform_indices = @transform_3, window_bounds = array<i64: 8, 128>}]} {
    %c0 = arith.constant 0 : index
    %c0_0 = arith.constant 0 : index
    %0 = vector.load %arg1[%c0, %c0_0] : memref<8x32xf32, #tpu.memory_space<vmem>>, vector<8x32xf32>
    %c0_1 = arith.constant 0 : index
    %c0_2 = arith.constant 0 : index
    %1 = vector.load %arg2[%c0_1, %c0_2] : memref<32x128xf32, #tpu.memory_space<vmem>>, vector<32x128xf32>
    %cst = arith.constant dense<0.000000e+00> : vector<8x128xf32>
    %2 = tpu.matmul %0, %1, %cst {dimension_numbers = #tpu.dot_dimension_numbers<[1], [0], [0], [1], [0, 0, 1, 1], [], []>} : vector<8x32xf32>, vector<32x128xf32>, vector<8x128xf32> -> vector<8x128xf32>
    %c0_3 = arith.constant 0 : index
    %c0_4 = arith.constant 0 : index
    %3 = vector.load %arg3[%c0_3, %c0_4] : memref<1x128xf32, #tpu.memory_space<vmem>>, vector<1x128xf32>
    %4 = vector.broadcast %3 : vector<1x128xf32> to vector<8x128xf32>
    %5 = arith.addf %2, %4 : vector<8x128xf32>
    %6 = tpu.iota {dimensions = array<i32: 1>} : vector<8x128xi32>
    %c7_i32 = arith.constant 7 : i32
    %7 = vector.broadcast %c7_i32 : i32 to vector<8x128xi32>
    %8 = arith.cmpi slt, %6, %7 : vector<8x128xi32>
    %c7_i32_5 = arith.constant 7 : i32
    %9 = vector.broadcast %c7_i32_5 : i32 to vector<8x128xi32>
    %10 = arith.cmpi sge, %6, %9 : vector<8x128xi32>
    %c11_i32 = arith.constant 11 : i32
    %11 = vector.broadcast %c11_i32 : i32 to vector<8x128xi32>
    %12 = arith.cmpi slt, %6, %11 : vector<8x128xi32>
    %13 = arith.andi %10, %12 : vector<8x128xi1>
    %cst_6 = arith.constant -1.000000e+30 : f32
    %14 = vector.broadcast %cst_6 : f32 to vector<8x128xf32>
    %15 = arith.select %8, %5, %14 : vector<8x128xi1>, vector<8x128xf32>
    %cst_7 = arith.constant dense<0xFF800000> : vector<8xf32>
    %16 = vector.multi_reduction <maximumf>, %15, %cst_7 [1] : vector<8x128xf32> to vector<8xf32>
    %17 = vector.shape_cast %16 : vector<8xf32> to vector<8x1xf32>
    %18 = vector.broadcast %17 : vector<8x1xf32> to vector<8x128xf32>
    %19 = arith.subf %15, %18 : vector<8x128xf32>
    %20 = math.exp %19 : vector<8x128xf32>
    %cst_8 = arith.constant 0.000000e+00 : f32
    %21 = vector.broadcast %cst_8 : f32 to vector<8x128xf32>
    %22 = arith.select %8, %20, %21 : vector<8x128xi1>, vector<8x128xf32>
    %cst_9 = arith.constant dense<0.000000e+00> : vector<8xf32>
    %23 = vector.multi_reduction <add>, %22, %cst_9 [1] : vector<8x128xf32> to vector<8xf32>
    %24 = vector.shape_cast %23 : vector<8xf32> to vector<8x1xf32>
    %25 = tpu.reciprocal %24 : vector<8x1xf32> -> vector<8x1xf32>
    %26 = vector.broadcast %25 : vector<8x1xf32> to vector<8x128xf32>
    %27 = arith.mulf %22, %26 : vector<8x128xf32>
    %cst_10 = arith.constant -1.000000e+30 : f32
    %28 = vector.broadcast %cst_10 : f32 to vector<8x128xf32>
    %29 = arith.select %13, %5, %28 : vector<8x128xi1>, vector<8x128xf32>
    %cst_11 = arith.constant dense<0xFF800000> : vector<8xf32>
    %30 = vector.multi_reduction <maximumf>, %29, %cst_11 [1] : vector<8x128xf32> to vector<8xf32>
    %31 = vector.shape_cast %30 : vector<8xf32> to vector<8x1xf32>
    %32 = vector.broadcast %31 : vector<8x1xf32> to vector<8x128xf32>
    %33 = arith.subf %29, %32 : vector<8x128xf32>
    %34 = math.exp %33 : vector<8x128xf32>
    %cst_12 = arith.constant 0.000000e+00 : f32
    %35 = vector.broadcast %cst_12 : f32 to vector<8x128xf32>
    %36 = arith.select %13, %34, %35 : vector<8x128xi1>, vector<8x128xf32>
    %cst_13 = arith.constant dense<0.000000e+00> : vector<8xf32>
    %37 = vector.multi_reduction <add>, %36, %cst_13 [1] : vector<8x128xf32> to vector<8xf32>
    %38 = vector.shape_cast %37 : vector<8xf32> to vector<8x1xf32>
    %39 = tpu.reciprocal %38 : vector<8x1xf32> -> vector<8x1xf32>
    %40 = vector.broadcast %39 : vector<8x1xf32> to vector<8x128xf32>
    %41 = arith.mulf %36, %40 : vector<8x128xf32>
    %42 = arith.addf %27, %41 : vector<8x128xf32>
    %c0_14 = arith.constant 0 : index
    %c0_15 = arith.constant 0 : index
    %43 = vector.load %arg4[%c0_14, %c0_15] : memref<8x128xf32, #tpu.memory_space<vmem>>, vector<8x128xf32>
    tpu.vector_store %arg4[%c0_14, %c0_15], %42 {strides = array<i32>} : memref<8x128xf32, #tpu.memory_space<vmem>>, vector<8x128xf32>,
    return
  }
  func.func @transform_0(%arg0: i32) -> (i32, i32) {
    %c0_i32 = arith.constant 0 : i32
    %c0_i32_0 = arith.constant 0 : i32
    return %arg0, %c0_i32 : i32, i32
  }
  func.func @transform_1(%arg0: i32) -> (i32, i32) {
    %c0_i32 = arith.constant 0 : i32
    %c0_i32_0 = arith.constant 0 : i32
    %c0_i32_1 = arith.constant 0 : i32
    return %c0_i32, %c0_i32_0 : i32, i32
  }
  func.func @transform_2(%arg0: i32) -> (i32, i32) {
    %c0_i32 = arith.constant 0 : i32
    %c0_i32_0 = arith.constant 0 : i32
    %c0_i32_1 = arith.constant 0 : i32
    return %c0_i32, %c0_i32_0 : i32, i32
  }
  func.func @transform_3(%arg0: i32) -> (i32, i32) {
    %c0_i32 = arith.constant 0 : i32
    %c0_i32_0 = arith.constant 0 : i32
    return %arg0, %c0_i32 : i32, i32
  }
}

</mosaic_0001>

<bundles_post_ra>
// kernel: tpu_custom_call.1
= control target key start
LH: loop header
LB: loop body
LE: loop exit
PB: predicated region body
PF: predicated region fallthrough
CT: control target
= control target key end

     0   :  { %8 = vsyncpa [#allocation3], 0  ;;  %s313_s0 = inlined_call_operand.hbm [shape: f32[8,32], index: 0, kind: input, shape index: {}]   ;;  %s314_s1 = inlined_call_operand.hbm [shape: f32[32,128], index: 1, kind: input, shape index: {}]   ;;  %s315_s2 = inlined_call_operand.vmem [shape: f32[1,128], index: 2, kind: input, shape index: {}]   ;;  %s316_s3 = inlined_call_operand.hbm [shape: f32[8,128], index: 3, kind: output, shape index: {}]  }
   0x1   :  { %9 = vsyncpa [#allocation6], 0 }
   0x2   :  { %10 = vsyncpa [#allocation4], 0  ;;  %s272_s12 = smov [#allocation2]   ;;  %s273_s14 = smov [#allocation5]  }
   0x3   :  { %s17_s13 = sshll.u32 %s272_s12, 4  ;;  %s26_s15 = sshll.u32 %s273_s14, 4  ;;  %s18_s13 = int_to_ptr.vmem [resolvable:$true] %s17_s13  ;;  %s27_s15 = int_to_ptr.vmem [resolvable:$true] %s26_s15 }
   0x4   :  { %s214_s16 = scalar_lea.vmem %s18_s13, 128  ;;  %p219_p1 = scmp.lt.s32.totalorder %s18_s13, %s18_s13 }
   0x5   :  { %p215_p0 = scmp.ne.s32.totalorder %s18_s13, %s214_s16  ;;  %p220_p2 = scmp.lt.s32.totalorder %s214_s16, %s214_s16 }
   0x7   :  { %p221_p3 = por %p220_p2, %p219_p1 }
   0x9   :  { %p222_p4 = pnand %p221_p3, %p215_p0 }
   0xb   :  { %225 = shalt.err (!%p222_p4)
}
   0xc   :  { %20 = dma.hbm_to_vmem [thread:$0]  %s313_s0, 128, %s18_s13, [#allocation3]  }
   0xd   :  { %s234_s19 = scalar_lea.vmem %s27_s15, 512  ;;  %p239_p6 = scmp.lt.s32.totalorder %s27_s15, %s27_s15 }
   0xe   :  { %p235_p5 = scmp.ne.s32.totalorder %s27_s15, %s234_s19  ;;  %p240_p7 = scmp.lt.s32.totalorder %s234_s19, %s234_s19 }
  0x10   :  { %p241_p8 = por %p240_p7, %p239_p6 }
  0x12   :  { %p242_p9 = pnand %p241_p8, %p235_p5 }
  0x14   :  { %245 = shalt.err (!%p242_p9)
}
  0x15   :  { %s274_s20 = smov 128   ;;  %s275_s21 = smov 8  }
  0x16   :  { %32 = dma.hbm_to_vmem [thread:$0]  %s314_s1, 512, %s27_s15, [#allocation6], %s274_s20, %s274_s20, %s275_s21  }
  0x17   :  { %266 = dma.done.wait [#allocation3], 128  }
  0x18   :  { %267 = vsyncadd [#allocation3], 4294967168 }
  0x19   :  { %268 = dma.done.wait [#allocation6], 512  }
  0x1a   :  { %269 = vsyncadd [#allocation6], 4294966784  ;;  %v276_v0 = vmov 0.0   ;;  %vm277_vm0 = vmmov 0   ;;  %v45_v1 = vld [vmem:[#allocation5 + $0x18] sm:$0xff]  ;;  %v44_v2 = vld [vmem:[#allocation5 + $0x10] sm:$0xff]  ;;  %v127_v6 = vlaneseq }
  0x1b   :  { %180 = vmatprep.subr.mxu0 %v276_v0  ;;  %188 = vmatprep.mubr.msk.f32.mxu0 %vm277_vm0, %v276_v0  ;;  %v43_v3 = vld [vmem:[#allocation5 + $0x8] sm:$0xff]  ;;  %v42_v4 = vld [vmem:[#allocation5] sm:$0xff]  ;;  %v41_v5 = vld [vmem:[#allocation2] sm:$0xff]  ;;  %vm53_vm1 = vcmask 261120  }
  0x1c   :  { %181 = vmatpush3.msra.mxu0 %v45_v1  ;;  %v128_v7 = vand.u32 127, %v127_v6  ;;  %v173_v8 = vld [vmem:[%s315_s2] ss:$0 sm:$0xff]  ;;  %s278_s2 = smov [#allocation7]  }
  0x1d   :  { %182 = vmatprep.subr.mxu0 %v276_v0  ;;  %s163_s24 = sshll.u32 %s278_s2, 4  ;;  %s164_s24 = int_to_ptr.vmem [resolvable:$true] %s163_s24 }
  0x1e   :  { %183 = vmatpush3.msra.mxu0 %v44_v2  ;;  %vm129_vm2 = vcmp.lt.s32.totalorder %v128_v7, 7  ;;  %vm130_vm3 = vcmp.ge.s32.totalorder %v128_v7, 7  ;;  %vm131_vm4 = vcmp.lt.s32.totalorder %v128_v7, 11  ;;  %s246_s25 = scalar_lea.vmem %s164_s24, 128  ;;  %p251_p11 = scmp.lt.s32.totalorder %s164_s24, %s164_s24 }
  0x1f   :  { %184 = vmatprep.subr.mxu0 %v276_v0  ;;  %vm132_vm5 = vmand %vm130_vm3, %vm131_vm4  ;;  %p247_p10 = scmp.ne.s32.totalorder %s164_s24, %s246_s25  ;;  %p252_p12 = scmp.lt.s32.totalorder %s246_s25, %s246_s25 }
  0x20   :  { %185 = vmatpush3.msra.mxu0 %v43_v3 }
  0x21   :  { %186 = vmatprep.subr.mxu0 %v276_v0  ;;  %p253_p13 = por %p252_p12, %p251_p11 }
  0x22   :  { %187 = vmatpush3.msra.mxu0 %v42_v4 }
  0x23   :  { %189 = vmatmul.mubr.msk.f32.vlgmr.msra.gmra.mxu0 %vm53_vm1, %v41_v5  ;;  %p254_p0 = pnand %p253_p13, %p247_p10 }
  0xe3   :  { %v123_v9 = vpop.f32.mrf.mxu0 }
  0xe4   :  { %v124_v10 = vadd.f32 %v173_v8, %v123_v9 }
  0xe5   :  { %v190_v11 = vpop.f32.mrf.mxu0 }
  0xe6   :  { %v133_v12 = vsel %vm129_vm2, %v124_v10, -1e+30  ;;  %v144_v13 = vsel %vm132_vm5, %v124_v10, -1e+30 }
  0xe7   :  { %134 = vmax.xlane.f32.xlu0 %v133_v12 }
  0xeb   :  { %145 = vmax.xlane.f32.xlu0 %v144_v13 }
 0x170   :  { %v135_v14 = vpop.xlane.xlu0 %134 }
 0x171   :  { %v136_v15 = vsub.f32 %v133_v12, %v135_v14 }
 0x173   :  { %v137_v16 = vmul.f32 1.442695, %v136_v15 }
 0x174   :  { %v146_v17 = vpop.xlane.xlu0 %145 }
 0x175   :  { %198 = vpow2.f32 %v137_v16  ;;  %v147_v18 = vsub.f32 %v144_v13, %v146_v17 }
 0x177   :  { %v148_v19 = vmul.f32 1.442695, %v147_v18 }
 0x179   :  { %200 = vpow2.f32 %v148_v19 }
 0x182   :  { %v199_v20 = vpop.eup %198 }
 0x183   :  { %v139_v21 = vsel %vm129_vm2, %v199_v20, 0.0 }
 0x184   :  { %140 = vadd.xlane.f32.xlu1 %v139_v21 }
 0x186   :  { %v201_v22 = vpop.eup %200 }
 0x187   :  { %v150_v23 = vsel %vm132_vm5, %v201_v22, 0.0 }
 0x188   :  { %151 = vadd.xlane.f32.xlu1 %v150_v23 }
 0x20d   :  { %v141_v24 = vpop.xlane.xlu1 %140 }
 0x20e   :  { %202 = vrcp.f32 %v141_v24 }
 0x211   :  { %v152_v25 = vpop.xlane.xlu1 %151 }
 0x212   :  { %204 = vrcp.f32 %v152_v25 }
 0x21b   :  { %v203_v26 = vpop.eup %202 }
 0x21c   :  { %v143_v28 = vmul.f32 %v203_v26, %v139_v21 }
 0x21f   :  { %v205_v27 = vpop.eup %204 }
 0x220   :  { %v154_v29 = vmul.f32 %v205_v27, %v150_v23 }
 0x222   :  { %v155_v30 = vadd.f32 %v154_v29, %v143_v28 }
 0x224   :  { %156 = vst [vmem:[#allocation7] sm:$0xff] %v155_v30 }
 0x225   :  { %257 = shalt.err (!%p254_p0)
}
 0x226   :  { %166 = dma.vmem_to_hbm [thread:$0]  %s164_s24, 128, %s316_s3, [#allocation4]  }
 0x227   :  { %270 = dma.done.wait [#allocation4], 128  }
 0x228   :  { %271 = vsyncadd [#allocation4], 4294967168 }
 0x229   :  { %170 = vsyncpa [#allocation3], 1 }
 0x22a   :  { %171 = vsyncpa [#allocation6], 1 }
 0x22b   :  { %172 = vsyncpa [#allocation4], 1 }

</bundles_post_ra>
